<compile_context>
chip_gen: v7x
topology: tpu7x:2x2x1
jax: 0.10.0
libtpu: 0.0.40
codegen_flags: <defaults>
</compile_context>

<pallas_src>
import functools

import jax
import jax.numpy as jnp
from jax.experimental import pallas as pl
from jax.experimental.pallas import tpu as pltpu

_LN_EPS = 1e-5
_VMEM_LIMIT = 32 * 1024 * 1024  # fits the scoped default on v5e/v6e and v7x (64 MiB phys)


def _row_tile(m: int) -> int:
    """Largest row tile (multiple of 8, <= 256) dividing m; falls back to full m."""
    for tm in (256, 128, 64, 32, 16, 8):
        if m % tm == 0:
            return tm
    return m


def _patchify(x, n):
    """einops 'b c (h px) (w py) -> b (h w) (c px py)' with px=py=n (layout only)."""
    b, c, hi, wi = x.shape
    gh, gw = hi // n, wi // n
    x = x.reshape(b, c, gh, n, gw, n)
    x = x.transpose(0, 2, 4, 1, 3, 5)
    return x.reshape(b, gh * gw, c * n * n)


# -----------------------------------------------------------------------------
# Kernel 1: tiled linear  y = x @ w + b   (w pre-transposed to [K, N])
# -----------------------------------------------------------------------------
def _linear_kernel(x_ref, w_ref, b_ref, o_ref, acc_ref):
    @pl.when(pl.program_id(1) == 0)
    def _():
        acc_ref[...] = jnp.zeros_like(acc_ref)

    acc_ref[...] += jnp.dot(x_ref[...], w_ref[...],
                            preferred_element_type=jnp.float32)

    @pl.when(pl.program_id(1) == pl.num_programs(1) - 1)
    def _():
        o_ref[...] = (acc_ref[...] + b_ref[...]).astype(o_ref.dtype)


def linear(x2d, w, b):
    m, k = x2d.shape
    n = w.shape[1]
    tm = _row_tile(m)
    tk = 512 if k % 512 == 0 else k
    return pl.pallas_call(
        _linear_kernel,
        out_shape=jax.ShapeDtypeStruct((m, n), x2d.dtype),
        grid_spec=pltpu.PrefetchScalarGridSpec(
            num_scalar_prefetch=0,
            grid=(m // tm, k // tk),
            in_specs=[
                pl.BlockSpec((tm, tk), lambda i, kk: (i, kk)),
                pl.BlockSpec((tk, n), lambda i, kk: (kk, 0)),
                pl.BlockSpec((1, n), lambda i, kk: (0, 0)),
            ],
            out_specs=pl.BlockSpec((tm, n), lambda i, kk: (i, 0)),
            scratch_shapes=[pltpu.VMEM((tm, n), jnp.float32)],
        ),
        compiler_params=pltpu.CompilerParams(
            dimension_semantics=("parallel", "arbitrary"),
            vmem_limit_bytes=_VMEM_LIMIT,
        ),
    )(x2d, w, b)


# -----------------------------------------------------------------------------
# Kernel 2: fused mixer MLP block on 2-D rows:
#   out = x + Linear2(GELU(Linear1(LayerNorm(x))))
# Used for both token-mixing (rows = [B*hidden, num_patches]) and
# channel-mixing (rows = [B*num_patches, hidden]).
# -----------------------------------------------------------------------------
def _mix_block_kernel(x_ref, g_ref, beta_ref, w1_ref, b1_ref, w2_ref, b2_ref,
                      o_ref, *, approximate_gelu):
    x = x_ref[...].astype(jnp.float32)
    mu = jnp.mean(x, axis=-1, keepdims=True)
    xc = x - mu
    var = jnp.mean(xc * xc, axis=-1, keepdims=True)          # biased var (torch LN)
    xn = xc * jax.lax.rsqrt(var + _LN_EPS)
    xn = xn * g_ref[...] + beta_ref[...]
    h = jnp.dot(xn, w1_ref[...], preferred_element_type=jnp.float32) + b1_ref[...]
    h = jax.nn.gelu(h, approximate=approximate_gelu)
    y = jnp.dot(h, w2_ref[...], preferred_element_type=jnp.float32) + b2_ref[...]
    o_ref[...] = (x + y).astype(o_ref.dtype)                 # residual fused


def mix_block(x2d, gamma, beta, w1, b1, w2, b2, *, approximate_gelu):
    m, d = x2d.shape
    h = w1.shape[1]
    tm = _row_tile(m)
    kernel = functools.partial(_mix_block_kernel, approximate_gelu=approximate_gelu)
    return pl.pallas_call(
        kernel,
        out_shape=jax.ShapeDtypeStruct((m, d), x2d.dtype),
        grid_spec=pltpu.PrefetchScalarGridSpec(
            num_scalar_prefetch=0,
            grid=(m // tm,),
            in_specs=[
                pl.BlockSpec((tm, d), lambda i: (i, 0)),
                pl.BlockSpec((1, d), lambda i: (0, 0)),
                pl.BlockSpec((1, d), lambda i: (0, 0)),
                pl.BlockSpec((d, h), lambda i: (0, 0)),
                pl.BlockSpec((1, h), lambda i: (0, 0)),
                pl.BlockSpec((h, d), lambda i: (0, 0)),
                pl.BlockSpec((1, d), lambda i: (0, 0)),
            ],
            out_specs=pl.BlockSpec((tm, d), lambda i: (i, 0)),
        ),
        compiler_params=pltpu.CompilerParams(
            dimension_semantics=("parallel",),      # row tiles shard across v7x TCs
            vmem_limit_bytes=_VMEM_LIMIT,
        ),
    )(x2d, gamma, beta, w1, b1, w2, b2)


# -----------------------------------------------------------------------------
# Kernel 3: fused mean-pool (over patches) + classifier, lane-dense padded output.
# -----------------------------------------------------------------------------
def _pool_classifier_kernel(x_ref, w_ref, b_ref, o_ref):
    x = x_ref[...].astype(jnp.float32)              # (B, S, D)
    pooled = jnp.mean(x, axis=1)                    # mean over patches -> (B, D)
    y = jnp.dot(pooled, w_ref[...], preferred_element_type=jnp.float32) + b_ref[...]
    o_ref[...] = y.astype(o_ref.dtype)


def pool_classifier(x, w_pad, b_pad, num_classes):
    # TODO(synk): folding this epilogue into the last channel-mix kernel would save
    # one HBM round-trip of the [B, S, D] activations; kept as its own fused kernel.
    bsz, s, d = x.shape
    npad = w_pad.shape[1]
    cost = pl.CostEstimate(
        flops=2 * bsz * d * npad + bsz * s * d,
        transcendentals=0,
        bytes_accessed=4 * (bsz * s * d + d * npad + npad + bsz * npad),
    )
    out = pl.pallas_call(
        _pool_classifier_kernel,
        out_shape=jax.ShapeDtypeStruct((bsz, npad), x.dtype),
        grid_spec=pltpu.PrefetchScalarGridSpec(
            num_scalar_prefetch=0,
            grid=(1,),
            in_specs=[
                pl.BlockSpec((bsz, s, d), lambda i: (0, 0, 0)),
                pl.BlockSpec((d, npad), lambda i: (0, 0)),
                pl.BlockSpec((1, npad), lambda i: (0, 0)),
            ],
            out_specs=pl.BlockSpec((bsz, npad), lambda i: (0, 0)),
        ),
        compiler_params=pltpu.CompilerParams(
            dimension_semantics=("arbitrary",),
            vmem_limit_bytes=_VMEM_LIMIT,
        ),
        cost_estimate=cost,
    )(x, w_pad, b_pad)
    return out[:, :num_classes]   # slice the lane-dense slab back to num_classes


# -----------------------------------------------------------------------------
# Full Mixer forward (Pallas kernels + layout glue in the wrapper).
# -----------------------------------------------------------------------------
def mixer_forward(params, x, *, approximate_gelu=False):
    n = params["patch_size"]
    patches = _patchify(x, n)                               # [B, S, P]
    b, s, p = patches.shape
    d = params["proj_w"].shape[1]

    # Project
    out = linear(patches.reshape(b * s, p), params["proj_w"],
                 params["proj_b"]).reshape(b, s, d)

    for layer in params["layers"]:
        # token mixing: operate row-wise on the transposed view [B*D, S]
        xt = jnp.transpose(out, (0, 2, 1)).reshape(b * d, s)
        xt = mix_block(xt, layer["tok_gamma"], layer["tok_beta"],
                       layer["tok_w1"], layer["tok_b1"],
                       layer["tok_w2"], layer["tok_b2"],
                       approximate_gelu=approximate_gelu)
        out = jnp.transpose(xt.reshape(b, d, s), (0, 2, 1))
        # channel mixing: rows = [B*S, D]
        xc = mix_block(out.reshape(b * s, d),
                       layer["ch_gamma"], layer["ch_beta"],
                       layer["ch_w1"], layer["ch_b1"],
                       layer["ch_w2"], layer["ch_b2"],
                       approximate_gelu=approximate_gelu)
        out = xc.reshape(b, s, d)

    return pool_classifier(out, params["cls_w_pad"], params["cls_b_pad"],
                           params["num_classes"])


# -----------------------------------------------------------------------------
# Pure-JAX reference (mirrors the PyTorch module) and parameter init.
# -----------------------------------------------------------------------------
def _layer_norm_ref(x, gamma, beta):
    mu = jnp.mean(x, axis=-1, keepdims=True)
    var = jnp.mean((x - mu) ** 2, axis=-1, keepdims=True)
    return (x - mu) * jax.lax.rsqrt(var + _LN_EPS) * gamma + beta


def mixer_reference(params, x, *, approximate_gelu=False):
    n = params["patch_size"]
    patches = _patchify(x, n)
    out = patches @ params["proj_w"] + params["proj_b"]
    for layer in params["layers"]:
        t = jnp.transpose(out, (0, 2, 1))
        tn = _layer_norm_ref(t, layer["tok_gamma"], layer["tok_beta"])
        tn = jax.nn.gelu(tn @ layer["tok_w1"] + layer["tok_b1"],
                         approximate=approximate_gelu)
        tn = tn @ layer["tok_w2"] + layer["tok_b2"]
        out = out + jnp.transpose(tn, (0, 2, 1))
        cn = _layer_norm_ref(out, layer["ch_gamma"], layer["ch_beta"])
        cn = jax.nn.gelu(cn @ layer["ch_w1"] + layer["ch_b1"],
                         approximate=approximate_gelu)
        cn = cn @ layer["ch_w2"] + layer["ch_b2"]
        out = out + cn
    pooled = jnp.mean(out, axis=1)
    nc = params["num_classes"]
    return pooled @ params["cls_w_pad"][:, :nc] + params["cls_b_pad"][0, :nc]


def init_params(key, *, num_classes, in_channels, img_size, patch_size,
                hidden_dim, token_mix_hidden, channel_mix_hidden, num_layer):
    num_patches = (img_size // patch_size) ** 2
    patch_dim = in_channels * patch_size ** 2

    def linear_init(k, fan_in, fan_out):
        kw, kb = jax.random.split(k)
        bound = fan_in ** -0.5
        w = jax.random.uniform(kw, (fan_in, fan_out), jnp.float32, -bound, bound)
        b = jax.random.uniform(kb, (1, fan_out), jnp.float32, -bound, bound)
        return w, b          # weight stored pre-transposed: [in, out]

    def ln_init(k, dim):
        kg, kb = jax.random.split(k)
        gamma = 1.0 + 0.1 * jax.random.normal(kg, (1, dim), jnp.float32)
        beta = 0.1 * jax.random.normal(kb, (1, dim), jnp.float32)
        return gamma, beta

    keys = jax.random.split(key, 2 + num_layer)
    proj_w, proj_b = linear_init(keys[0], patch_dim, hidden_dim)
    layers = []
    for li in range(num_layer):
        ks = jax.random.split(keys[2 + li], 6)
        tg, tb = ln_init(ks[0], num_patches)
        tw1, tb1 = linear_init(ks[1], num_patches, token_mix_hidden)
        tw2, tb2 = linear_init(ks[2], token_mix_hidden, num_patches)
        cg, cb = ln_init(ks[3], hidden_dim)
        cw1, cb1 = linear_init(ks[4], hidden_dim, channel_mix_hidden)
        cw2, cb2 = linear_init(ks[5], channel_mix_hidden, hidden_dim)
        layers.append(dict(tok_gamma=tg, tok_beta=tb, tok_w1=tw1, tok_b1=tb1,
                           tok_w2=tw2, tok_b2=tb2,
                           ch_gamma=cg, ch_beta=cb, ch_w1=cw1, ch_b1=cb1,
                           ch_w2=cw2, ch_b2=cb2))

    cls_w, cls_b = linear_init(keys[1], hidden_dim, num_classes)
    npad = ((num_classes + 127) // 128) * 128      # lane-dense classifier slab
    cls_w_pad = jnp.zeros((hidden_dim, npad), jnp.float32).at[:, :num_classes].set(cls_w)
    cls_b_pad = jnp.zeros((1, npad), jnp.float32).at[:, :num_classes].set(cls_b)

    return dict(patch_size=patch_size, num_classes=num_classes,
                proj_w=proj_w, proj_b=proj_b, layers=layers,
                cls_w_pad=cls_w_pad, cls_b_pad=cls_b_pad)


if __name__ == "__main__":
    # Small shapes consistent with the module defaults (scaled down).
    B, C, IMG, PATCH = 2, 4, 16, 4          # num_patches = 16, patch_dim = 64
    HIDDEN, TOK_H, CH_H, LAYERS, CLASSES = 32, 16, 64, 2, 10

    key = jax.random.PRNGKey(0)
    kp, kx = jax.random.split(key)
    params = init_params(kp, num_classes=CLASSES, in_channels=C, img_size=IMG,
                         patch_size=PATCH, hidden_dim=HIDDEN,
                         token_mix_hidden=TOK_H, channel_mix_hidden=CH_H,
                         num_layer=LAYERS)
    x = jax.random.normal(kx, (B, C, IMG, IMG), dtype=jnp.float32)

    # Exact (erf) GELU matches PyTorch nn.GELU(); fall back to the tanh
    # approximation only if this Mosaic build cannot lower erf.
    try:
        out = jax.block_until_ready(mixer_forward(params, x, approximate_gelu=False))
        approx = False
    except Exception:
        # TODO(synk): drop this fallback once erf lowering is guaranteed on the target build.
        out = jax.block_until_ready(mixer_forward(params, x, approximate_gelu=True))
        approx = True

    with jax.default_matmul_precision("highest"):
        ref = mixer_reference(params, x, approximate_gelu=approx)

    assert out.shape == (B, CLASSES), out.shape
    assert jnp.allclose(out, ref, atol=1e-3, rtol=1e-3), \
        float(jnp.max(jnp.abs(out - ref)))

    print("KERNEL_OK")
</pallas_src>

<mosaic_0001>
module attributes {stable_mosaic.version = 11 : i64} {
  func.func @_linear_kernel(%arg0: i32, %arg1: i32, %arg2: memref<32x64xf32, #tpu.memory_space<vmem>>, %arg3: memref<64x32xf32, #tpu.memory_space<vmem>>, %arg4: memref<1x32xf32, #tpu.memory_space<vmem>>, %arg5: memref<32x32xf32, #tpu.memory_space<vmem>>, %arg6: memref<32x32xf32, #tpu.memory_space<vmem>>) attributes {dimension_semantics = [#tpu.dimension_semantics<parallel>, #tpu.dimension_semantics<arbitrary>], iteration_bounds = array<i64: 1, 1>, scalar_prefetch = 0 : i64, scratch_operands = 1 : i64, tpu.core_type = #tpu.core_type<tc>, window_params = [{transform_indices = @transform_0, window_bounds = array<i64: 32, 64>}, {transform_indices = @transform_1, window_bounds = array<i64: 64, 32>}, {pipeline_mode = #tpu.pipeline_mode<synchronous>, transform_indices = @transform_2, window_bounds = array<i64: 1, 32>}, {transform_indices = @transform_3, window_bounds = array<i64: 32, 32>}]} {
    %c0_i32 = arith.constant 0 : i32
    %0 = arith.cmpi eq, %arg1, %c0_i32 : i32
    %1 = arith.extui %0 : i1 to i32
    %c0_i32_0 = arith.constant 0 : i32
    %2 = arith.cmpi ne, %1, %c0_i32_0 : i32
    scf.if %2 {
      %cst_10 = arith.constant 0.000000e+00 : f32
      %12 = vector.broadcast %cst_10 : f32 to vector<32x32xf32>
      %c0_11 = arith.constant 0 : index
      %c0_12 = arith.constant 0 : index
      %13 = vector.load %arg6[%c0_11, %c0_12] : memref<32x32xf32, #tpu.memory_space<vmem>>, vector<32x32xf32>
      tpu.vector_store %arg6[%c0_11, %c0_12], %12 {strides = array<i32>} : memref<32x32xf32, #tpu.memory_space<vmem>>, vector<32x32xf32>,
    } else {
    }
    %c0 = arith.constant 0 : index
    %c0_1 = arith.constant 0 : index
    %3 = vector.load %arg6[%c0, %c0_1] : memref<32x32xf32, #tpu.memory_space<vmem>>, vector<32x32xf32>
    %c0_2 = arith.constant 0 : index
    %c0_3 = arith.constant 0 : index
    %4 = vector.load %arg2[%c0_2, %c0_3] : memref<32x64xf32, #tpu.memory_space<vmem>>, vector<32x64xf32>
    %c0_4 = arith.constant 0 : index
    %c0_5 = arith.constant 0 : index
    %5 = vector.load %arg3[%c0_4, %c0_5] : memref<64x32xf32, #tpu.memory_space<vmem>>, vector<64x32xf32>
    %cst = arith.constant dense<0.000000e+00> : vector<32x32xf32>
    %6 = tpu.matmul %4, %5, %cst {dimension_numbers = #tpu.dot_dimension_numbers<[1], [0], [0], [1], [0, 0, 1, 1], [], []>} : vector<32x64xf32>, vector<64x32xf32>, vector<32x32xf32> -> vector<32x32xf32>
    %7 = arith.addf %3, %6 : vector<32x32xf32>
    %c0_6 = arith.constant 0 : index
    %c0_7 = arith.constant 0 : index
    %8 = vector.load %arg6[%c0_6, %c0_7] : memref<32x32xf32, #tpu.memory_space<vmem>>, vector<32x32xf32>
    tpu.vector_store %arg6[%c0_6, %c0_7], %7 {strides = array<i32>} : memref<32x32xf32, #tpu.memory_space<vmem>>, vector<32x32xf32>,
    %c0_i32_8 = arith.constant 0 : i32
    %9 = arith.cmpi eq, %arg1, %c0_i32_8 : i32
    %10 = arith.extui %9 : i1 to i32
    %c0_i32_9 = arith.constant 0 : i32
    %11 = arith.cmpi ne, %10, %c0_i32_9 : i32
    scf.if %11 {
      %c0_10 = arith.constant 0 : index
      %c0_11 = arith.constant 0 : index
      %12 = vector.load %arg6[%c0_10, %c0_11] : memref<32x32xf32, #tpu.memory_space<vmem>>, vector<32x32xf32>
      %c0_12 = arith.constant 0 : index
      %c0_13 = arith.constant 0 : index
      %13 = vector.load %arg4[%c0_12, %c0_13] : memref<1x32xf32, #tpu.memory_space<vmem>>, vector<1x32xf32>
      %14 = vector.broadcast %13 : vector<1x32xf32> to vector<32x32xf32>
      %15 = arith.addf %12, %14 : vector<32x32xf32>
      %c0_14 = arith.constant 0 : index
      %c0_15 = arith.constant 0 : index
      %16 = vector.load %arg5[%c0_14, %c0_15] : memref<32x32xf32, #tpu.memory_space<vmem>>, vector<32x32xf32>
      tpu.vector_store %arg5[%c0_14, %c0_15], %15 {strides = array<i32>} : memref<32x32xf32, #tpu.memory_space<vmem>>, vector<32x32xf32>,
    } else {
    }
    return
  }
  func.func @transform_0(%arg0: i32, %arg1: i32) -> (i32, i32) {
    %c0_i32 = arith.constant 0 : i32
    return %arg0, %arg1 : i32, i32
  }
  func.func @transform_1(%arg0: i32, %arg1: i32) -> (i32, i32) {
    %c0_i32 = arith.constant 0 : i32
    %c0_i32_0 = arith.constant 0 : i32
    return %arg1, %c0_i32 : i32, i32
  }
  func.func @transform_2(%arg0: i32, %arg1: i32) -> (i32, i32) {
    %c0_i32 = arith.constant 0 : i32
    %c0_i32_0 = arith.constant 0 : i32
    %c0_i32_1 = arith.constant 0 : i32
    return %c0_i32, %c0_i32_0 : i32, i32
  }
  func.func @transform_3(%arg0: i32, %arg1: i32) -> (i32, i32) {
    %c0_i32 = arith.constant 0 : i32
    %c0_i32_0 = arith.constant 0 : i32
    return %arg0, %c0_i32 : i32, i32
  }
}

module attributes {stable_mosaic.version = 11 : i64} {
  func.func @_linear_kernel(%arg0: i32, %arg1: i32, %arg2: memref<32x64xf32, #tpu.memory_space<vmem>>, %arg3: memref<64x32xf32, #tpu.memory_space<vmem>>, %arg4: memref<1x32xf32, #tpu.memory_space<vmem>>, %arg5: memref<32x32xf32, #tpu.memory_space<vmem>>, %arg6: memref<32x32xf32, #tpu.memory_space<vmem>>) attributes {dimension_semantics = [#tpu.dimension_semantics<parallel>, #tpu.dimension_semantics<arbitrary>], iteration_bounds = array<i64: 1, 1>, scalar_prefetch = 0 : i64, scratch_operands = 1 : i64, tpu.core_type = #tpu.core_type<tc>, window_params = [{transform_indices = @transform_0, window_bounds = array<i64: 32, 64>}, {transform_indices = @transform_1, window_bounds = array<i64: 64, 32>}, {pipeline_mode = #tpu.pipeline_mode<synchronous>, transform_indices = @transform_2, window_bounds = array<i64: 1, 32>}, {transform_indices = @transform_3, window_bounds = array<i64: 32, 32>}]} {
    %c0_i32 = arith.constant 0 : i32
    %0 = arith.cmpi eq, %arg1, %c0_i32 : i32
    %1 = arith.extui %0 : i1 to i32
    %c0_i32_0 = arith.constant 0 : i32
    %2 = arith.cmpi ne, %1, %c0_i32_0 : i32
    scf.if %2 {
      %cst_10 = arith.constant 0.000000e+00 : f32
      %12 = vector.broadcast %cst_10 : f32 to vector<32x32xf32>
      %c0_11 = arith.constant 0 : index
      %c0_12 = arith.constant 0 : index
      %13 = vector.load %arg6[%c0_11, %c0_12] : memref<32x32xf32, #tpu.memory_space<vmem>>, vector<32x32xf32>
      tpu.vector_store %arg6[%c0_11, %c0_12], %12 {strides = array<i32>} : memref<32x32xf32, #tpu.memory_space<vmem>>, vector<32x32xf32>,
    } else {
    }
    %c0 = arith.constant 0 : index
    %c0_1 = arith.constant 0 : index
    %3 = vector.load %arg6[%c0, %c0_1] : memref<32x32xf32, #tpu.memory_space<vmem>>, vector<32x32xf32>
    %c0_2 = arith.constant 0 : index
    %c0_3 = arith.constant 0 : index
    %4 = vector.load %arg2[%c0_2, %c0_3] : memref<32x64xf32, #tpu.memory_space<vmem>>, vector<32x64xf32>
    %c0_4 = arith.constant 0 : index
    %c0_5 = arith.constant 0 : index
    %5 = vector.load %arg3[%c0_4, %c0_5] : memref<64x32xf32, #tpu.memory_space<vmem>>, vector<64x32xf32>
    %cst = arith.constant dense<0.000000e+00> : vector<32x32xf32>
    %6 = tpu.matmul %4, %5, %cst {dimension_numbers = #tpu.dot_dimension_numbers<[1], [0], [0], [1], [0, 0, 1, 1], [], []>} : vector<32x64xf32>, vector<64x32xf32>, vector<32x32xf32> -> vector<32x32xf32>
    %7 = arith.addf %3, %6 : vector<32x32xf32>
    %c0_6 = arith.constant 0 : index
    %c0_7 = arith.constant 0 : index
    %8 = vector.load %arg6[%c0_6, %c0_7] : memref<32x32xf32, #tpu.memory_space<vmem>>, vector<32x32xf32>
    tpu.vector_store %arg6[%c0_6, %c0_7], %7 {strides = array<i32>} : memref<32x32xf32, #tpu.memory_space<vmem>>, vector<32x32xf32>,
    %c0_i32_8 = arith.constant 0 : i32
    %9 = arith.cmpi eq, %arg1, %c0_i32_8 : i32
    %10 = arith.extui %9 : i1 to i32
    %c0_i32_9 = arith.constant 0 : i32
    %11 = arith.cmpi ne, %10, %c0_i32_9 : i32
    scf.if %11 {
      %c0_10 = arith.constant 0 : index
      %c0_11 = arith.constant 0 : index
      %12 = vector.load %arg6[%c0_10, %c0_11] : memref<32x32xf32, #tpu.memory_space<vmem>>, vector<32x32xf32>
      %c0_12 = arith.constant 0 : index
      %c0_13 = arith.constant 0 : index
      %13 = vector.load %arg4[%c0_12, %c0_13] : memref<1x32xf32, #tpu.memory_space<vmem>>, vector<1x32xf32>
      %14 = vector.broadcast %13 : vector<1x32xf32> to vector<32x32xf32>
      %15 = arith.addf %12, %14 : vector<32x32xf32>
      %c0_14 = arith.constant 0 : index
      %c0_15 = arith.constant 0 : index
      %16 = vector.load %arg5[%c0_14, %c0_15] : memref<32x32xf32, #tpu.memory_space<vmem>>, vector<32x32xf32>
      tpu.vector_store %arg5[%c0_14, %c0_15], %15 {strides = array<i32>} : memref<32x32xf32, #tpu.memory_space<vmem>>, vector<32x32xf32>,
    } else {
    }
    return
  }
  func.func @transform_0(%arg0: i32, %arg1: i32) -> (i32, i32) {
    %c0_i32 = arith.constant 0 : i32
    return %arg0, %arg1 : i32, i32
  }
  func.func @transform_1(%arg0: i32, %arg1: i32) -> (i32, i32) {
    %c0_i32 = arith.constant 0 : i32
    %c0_i32_0 = arith.constant 0 : i32
    return %arg1, %c0_i32 : i32, i32
  }
  func.func @transform_2(%arg0: i32, %arg1: i32) -> (i32, i32) {
    %c0_i32 = arith.constant 0 : i32
    %c0_i32_0 = arith.constant 0 : i32
    %c0_i32_1 = arith.constant 0 : i32
    return %c0_i32, %c0_i32_0 : i32, i32
  }
  func.func @transform_3(%arg0: i32, %arg1: i32) -> (i32, i32) {
    %c0_i32 = arith.constant 0 : i32
    %c0_i32_0 = arith.constant 0 : i32
    return %arg0, %c0_i32 : i32, i32
  }
}

</mosaic_0001>

<bundles_post_ra>
// kernel: tpu_custom_call.1
= control target key start
LH: loop header
LB: loop body
LE: loop exit
PB: predicated region body
PF: predicated region fallthrough
CT: control target
= control target key end

     0   :  { %vm19_vm0 = vcmask 261120   ;;  %v276_v5 = vmov 0.0   ;;  %vm40_vm1 = vcmask 523264   ;;  %s367_s0 = inlined_call_operand.vmem [shape: f32[32,64], index: 0, kind: input, shape index: {}]   ;;  %s368_s1 = inlined_call_operand.vmem [shape: f32[64,32], index: 1, kind: input, shape index: {}]   ;;  %s369_s2 = inlined_call_operand.vmem [shape: f32[1,32], index: 2, kind: input, shape index: {}]   ;;  %s370_s3 = inlined_call_operand.hbm [shape: f32[32,32], index: 3, kind: output, shape index: {}]  }
   0x1   :  { %v32_v0 = vld [vmem:[%s368_s1] sm:$0xff]  ;;  %v33_v1 = vld [vmem:[%s368_s1 + $0x8] sm:$0xff]  ;;  %v34_v2 = vld [vmem:[%s368_s1 + $0x10] sm:$0xff]  ;;  %21 = vst.msk [vmem:[#allocation2 + $0x8] sm:$0xff] %vm19_vm0, %v276_v5 }
   0x2   :  { %v224_v3 = vpack.c.bf16 %v33_v1, %v32_v0  ;;  %v35_v4 = vld [vmem:[%s368_s1 + $0x18] sm:$0xff]  ;;  %20 = vst.msk [vmem:[#allocation2] sm:$0xff] %vm19_vm0, %v276_v5  ;;  %22 = vst.msk [vmem:[#allocation2 + $0x10] sm:$0xff] %vm19_vm0, %v276_v5  ;;  %v36_v7 = vld [vmem:[%s368_s1 + $0x20] sm:$0xff] }
   0x3   :  { %23 = vst.msk [vmem:[#allocation2 + $0x18] sm:$0xff] %vm19_vm0, %v276_v5  ;;  %v228_v6 = vpack.c.bf16 %v35_v4, %v34_v2  ;;  %v37_v8 = vld [vmem:[%s368_s1 + $0x28] sm:$0xff]  ;;  %v28_v9 = vld [vmem:[%s367_s0] sm:$0xff]  ;;  %v30_v10 = vld [vmem:[%s367_s0 + $0x10] sm:$0xff] }
   0x4   :  { %225 = vmatprep.subr.bf16.mxu0 %v224_v3  ;;  %240 = vmatprep.subr.bf16.mxu1 %v224_v3 }
   0x5   :  { %227 = vmatpush3.bf16.msra.mxu0 %v224_v3  ;;  %244 = vmatpush3.bf16.msra.mxu1 %v224_v3 }
   0x6   :  { %8 = vsyncpa [#allocation4], 0  ;;  %229 = vmatprep.subr.bf16.mxu0 %v228_v6  ;;  %241 = vmatprep.subr.bf16.mxu1 %v228_v6  ;;  %v232_v11 = vpack.c.bf16 %v37_v8, %v36_v7  ;;  %v38_v12 = vld [vmem:[%s368_s1 + $0x30] sm:$0xff]  ;;  %v39_v13 = vld [vmem:[%s368_s1 + $0x38] sm:$0xff]  ;;  %s277_s9 = smov [#allocation3]  }
   0x7   :  { %218 = vmatprep.mubr.msk.f32.mxu0 %vm40_vm1, %v28_v9  ;;  %221 = vmatprep.mubr.msk.f32.mxu1 %vm40_vm1, %v30_v10  ;;  %v236_v14 = vpack.c.bf16 %v39_v13, %v38_v12  ;;  %v29_v15 = vld [vmem:[%s367_s0 + $0x8] sm:$0xff]  ;;  %v31_v16 = vld [vmem:[%s367_s0 + $0x18] sm:$0xff]  ;;  %v189_v29 = vld [vmem:[%s369_s2] ss:$0 sm:$0xff]  ;;  %s174_s10 = sshll.u32 %s277_s9, 4  ;;  %s175_s10 = int_to_ptr.vmem [resolvable:$true] %s174_s10 }
   0x8   :  { %v25_v17 = vld [vmem:[#allocation2 + $0x8] sm:$0xff]  ;;  %s252_s2 = scalar_lea.vmem %s175_s10, 512  ;;  %p257_p1 = scmp.lt.s32.totalorder %s175_s10, %s175_s10 }
   0x9   :  { %231 = vmatpush3.bf16.msra.mxu0 %v228_v6  ;;  %245 = vmatpush3.bf16.msra.mxu1 %v228_v6  ;;  %v24_v19 = vld [vmem:[#allocation2] sm:$0xff]  ;;  %v26_v20 = vld [vmem:[#allocation2 + $0x10] sm:$0xff]  ;;  %p253_p0 = scmp.ne.s32.totalorder %s175_s10, %s252_s2  ;;  %p258_p2 = scmp.lt.s32.totalorder %s252_s2, %s252_s2 }
   0xa   :  { %233 = vmatprep.subr.bf16.mxu0 %v232_v11  ;;  %242 = vmatprep.subr.bf16.mxu1 %v232_v11  ;;  %v27_v18 = vld [vmem:[#allocation2 + $0x18] sm:$0xff] }
   0xb   :  { %p259_p3 = por %p258_p2, %p257_p1 }
   0xd   :  { %235 = vmatpush3.bf16.msra.mxu0 %v232_v11  ;;  %246 = vmatpush3.bf16.msra.mxu1 %v232_v11  ;;  %p260_p4 = pnand %p259_p3, %p253_p0 }
   0xe   :  { %237 = vmatprep.subr.bf16.mxu0 %v236_v14  ;;  %243 = vmatprep.subr.bf16.mxu1 %v236_v14 }
  0x11   :  { %239 = vmatpush3.bf16.msra.mxu0 %v236_v14  ;;  %247 = vmatpush3.bf16.msra.mxu1 %v236_v14 }
  0x14   :  { %219 = vmatmul.mubr.msk.f32.vlgmr.msra.gmra.mrb[0].mxu0 %vm40_vm1, %v29_v15  ;;  %222 = vmatmul.mubr.msk.f32.vlgmr.msra.gmra.mrb[0].mxu1 %vm40_vm1, %v31_v16 }
  0xe7   :  { %v220_v21 = vpop.f32.mrb[0].mxu0  ;;  %v223_v22 = vpop.f32.mrb[0].mxu1 }
  0xe8   :  { %v139_v23 = vadd.f32 %v220_v21, %v25_v17  ;;  %v141_v24 = vadd.f32 %v223_v22, %v27_v18  ;;  %v119_v25 = vpop.f32.mrb[1].mxu0  ;;  %v129_v26 = vpop.f32.mrb[1].mxu1 }
  0xe9   :  { %v138_v27 = vadd.f32 %v119_v25, %v24_v19  ;;  %v140_v28 = vadd.f32 %v129_v26, %v26_v20 }
  0xea   :  { %144 = vst.msk [vmem:[#allocation2 + $0x8] sm:$0xff] %vm19_vm0, %v139_v23  ;;  %146 = vst.msk [vmem:[#allocation2 + $0x18] sm:$0xff] %vm19_vm0, %v141_v24 }
  0xeb   :  { %143 = vst.msk [vmem:[#allocation2] sm:$0xff] %vm19_vm0, %v138_v27  ;;  %145 = vst.msk [vmem:[#allocation2 + $0x10] sm:$0xff] %vm19_vm0, %v140_v28 }
  0xf1   :  { %v151_v30 = vld [vmem:[#allocation2 + $0x8] sm:$0xff]  ;;  %v153_v31 = vld [vmem:[#allocation2 + $0x18] sm:$0xff] }
  0xf2   :  { %v150_v32 = vld [vmem:[#allocation2] sm:$0xff]  ;;  %v152_v33 = vld [vmem:[#allocation2 + $0x10] sm:$0xff]  ;;  %v162_v34 = vadd.f32 %v189_v29, %v151_v30  ;;  %v164_v35 = vadd.f32 %v189_v29, %v153_v31 }
  0xf3   :  { %v161_v36 = vadd.f32 %v189_v29, %v150_v32  ;;  %v163_v37 = vadd.f32 %v189_v29, %v152_v33 }
  0xf4   :  { %166 = vst.msk [vmem:[#allocation3 + $0x8] sm:$0xff] %vm19_vm0, %v162_v34  ;;  %168 = vst.msk [vmem:[#allocation3 + $0x18] sm:$0xff] %vm19_vm0, %v164_v35 }
  0xf5   :  { %165 = vst.msk [vmem:[#allocation3] sm:$0xff] %vm19_vm0, %v161_v36  ;;  %167 = vst.msk [vmem:[#allocation3 + $0x10] sm:$0xff] %vm19_vm0, %v163_v37 }
  0xf6   :  { %263 = shalt.err (!%p260_p4)
}
  0xf7   :  { %s264_s13 = scalar_lea.hbm %s370_s3, 512 }
  0xf8   :  { %p265_p5 = scmp.ne.s32.totalorder %s370_s3, %s264_s13  ;;  %p268_p6 = scmp.lt.u32.totalorder %s264_s13, %s370_s3 }
  0xfa   :  { %p270_p7 = pnand %p268_p6, %p265_p5 }
  0xfc   :  { %273 = shalt.err (!%p270_p7)
}
  0xfd   :  { %s278_s18 = smov 128   ;;  %s279_s19 = smov 8  }
  0xfe   :  { %180 = dma.vmem_to_hbm [thread:$0]  %s175_s10, 512, %s370_s3, [#allocation4], %s278_s18, %s278_s18, %s279_s19  }
  0xff   :  { %274 = dma.done.wait [#allocation4], 512  }
 0x100   :  { %275 = vsyncadd [#allocation4], 4294966784 }
 0x101   :  { %184 = vsyncpa [#allocation4], 1 }

// kernel: tpu_custom_call.1
= control target key start
LH: loop header
LB: loop body
LE: loop exit
PB: predicated region body
PF: predicated region fallthrough
CT: control target
= control target key end

     0   :  { %vm19_vm0 = vcmask 261120   ;;  %v276_v5 = vmov 0.0   ;;  %vm40_vm1 = vcmask 523264   ;;  %s367_s0 = inlined_call_operand.vmem [shape: f32[32,64], index: 0, kind: input, shape index: {}]   ;;  %s368_s1 = inlined_call_operand.vmem [shape: f32[64,32], index: 1, kind: input, shape index: {}]   ;;  %s369_s2 = inlined_call_operand.vmem [shape: f32[1,32], index: 2, kind: input, shape index: {}]   ;;  %s370_s3 = inlined_call_operand.hbm [shape: f32[32,32], index: 3, kind: output, shape index: {}]  }
   0x1   :  { %v32_v0 = vld [vmem:[%s368_s1] sm:$0xff]  ;;  %v33_v1 = vld [vmem:[%s368_s1 + $0x8] sm:$0xff]  ;;  %v34_v2 = vld [vmem:[%s368_s1 + $0x10] sm:$0xff]  ;;  %21 = vst.msk [vmem:[#allocation2 + $0x8] sm:$0xff] %vm19_vm0, %v276_v5 }
   0x2   :  { %v224_v3 = vpack.c.bf16 %v33_v1, %v32_v0  ;;  %v35_v4 = vld [vmem:[%s368_s1 + $0x18] sm:$0xff]  ;;  %20 = vst.msk [vmem:[#allocation2] sm:$0xff] %vm19_vm0, %v276_v5  ;;  %22 = vst.msk [vmem:[#allocation2 + $0x10] sm:$0xff] %vm19_vm0, %v276_v5  ;;  %v36_v7 = vld [vmem:[%s368_s1 + $0x20] sm:$0xff] }
   0x3   :  { %23 = vst.msk [vmem:[#allocation2 + $0x18] sm:$0xff] %vm19_vm0, %v276_v5  ;;  %v228_v6 = vpack.c.bf16 %v35_v4, %v34_v2  ;;  %v37_v8 = vld [vmem:[%s368_s1 + $0x28] sm:$0xff]  ;;  %v28_v9 = vld [vmem:[%s367_s0] sm:$0xff]  ;;  %v30_v10 = vld [vmem:[%s367_s0 + $0x10] sm:$0xff] }
   0x4   :  { %225 = vmatprep.subr.bf16.mxu0 %v224_v3  ;;  %240 = vmatprep.subr.bf16.mxu1 %v224_v3 }
   0x5   :  { %227 = vmatpush3.bf16.msra.mxu0 %v224_v3  ;;  %244 = vmatpush3.bf16.msra.mxu1 %v224_v3 }
   0x6   :  { %8 = vsyncpa [#allocation4], 0  ;;  %229 = vmatprep.subr.bf16.mxu0 %v228_v6  ;;  %241 = vmatprep.subr.bf16.mxu1 %v228_v6  ;;  %v232_v11 = vpack.c.bf16 %v37_v8, %v36_v7  ;;  %v38_v12 = vld [vmem:[%s368_s1 + $0x30] sm:$0xff]  ;;  %v39_v13 = vld [vmem:[%s368_s1 + $0x38] sm:$0xff]  ;;  %s277_s9 = smov [#allocation3]  }
   0x7   :  { %218 = vmatprep.mubr.msk.f32.mxu0 %vm40_vm1, %v28_v9  ;;  %221 = vmatprep.mubr.msk.f32.mxu1 %vm40_vm1, %v30_v10  ;;  %v236_v14 = vpack.c.bf16 %v39_v13, %v38_v12  ;;  %v29_v15 = vld [vmem:[%s367_s0 + $0x8] sm:$0xff]  ;;  %v31_v16 = vld [vmem:[%s367_s0 + $0x18] sm:$0xff]  ;;  %v189_v29 = vld [vmem:[%s369_s2] ss:$0 sm:$0xff]  ;;  %s174_s10 = sshll.u32 %s277_s9, 4  ;;  %s175_s10 = int_to_ptr.vmem [resolvable:$true] %s174_s10 }
   0x8   :  { %v25_v17 = vld [vmem:[#allocation2 + $0x8] sm:$0xff]  ;;  %s252_s2 = scalar_lea.vmem %s175_s10, 512  ;;  %p257_p1 = scmp.lt.s32.totalorder %s175_s10, %s175_s10 }
   0x9   :  { %231 = vmatpush3.bf16.msra.mxu0 %v228_v6  ;;  %245 = vmatpush3.bf16.msra.mxu1 %v228_v6  ;;  %v24_v19 = vld [vmem:[#allocation2] sm:$0xff]  ;;  %v26_v20 = vld [vmem:[#allocation2 + $0x10] sm:$0xff]  ;;  %p253_p0 = scmp.ne.s32.totalorder %s175_s10, %s252_s2  ;;  %p258_p2 = scmp.lt.s32.totalorder %s252_s2, %s252_s2 }
   0xa   :  { %233 = vmatprep.subr.bf16.mxu0 %v232_v11  ;;  %242 = vmatprep.subr.bf16.mxu1 %v232_v11  ;;  %v27_v18 = vld [vmem:[#allocation2 + $0x18] sm:$0xff] }
   0xb   :  { %p259_p3 = por %p258_p2, %p257_p1 }
   0xd   :  { %235 = vmatpush3.bf16.msra.mxu0 %v232_v11  ;;  %246 = vmatpush3.bf16.msra.mxu1 %v232_v11  ;;  %p260_p4 = pnand %p259_p3, %p253_p0 }
   0xe   :  { %237 = vmatprep.subr.bf16.mxu0 %v236_v14  ;;  %243 = vmatprep.subr.bf16.mxu1 %v236_v14 }
  0x11   :  { %239 = vmatpush3.bf16.msra.mxu0 %v236_v14  ;;  %247 = vmatpush3.bf16.msra.mxu1 %v236_v14 }
  0x14   :  { %219 = vmatmul.mubr.msk.f32.vlgmr.msra.gmra.mrb[0].mxu0 %vm40_vm1, %v29_v15  ;;  %222 = vmatmul.mubr.msk.f32.vlgmr.msra.gmra.mrb[0].mxu1 %vm40_vm1, %v31_v16 }
  0xe7   :  { %v220_v21 = vpop.f32.mrb[0].mxu0  ;;  %v223_v22 = vpop.f32.mrb[0].mxu1 }
  0xe8   :  { %v139_v23 = vadd.f32 %v220_v21, %v25_v17  ;;  %v141_v24 = vadd.f32 %v223_v22, %v27_v18  ;;  %v119_v25 = vpop.f32.mrb[1].mxu0  ;;  %v129_v26 = vpop.f32.mrb[1].mxu1 }
  0xe9   :  { %v138_v27 = vadd.f32 %v119_v25, %v24_v19  ;;  %v140_v28 = vadd.f32 %v129_v26, %v26_v20 }
  0xea   :  { %144 = vst.msk [vmem:[#allocation2 + $0x8] sm:$0xff] %vm19_vm0, %v139_v23  ;;  %146 = vst.msk [vmem:[#allocation2 + $0x18] sm:$0xff] %vm19_vm0, %v141_v24 }
  0xeb   :  { %143 = vst.msk [vmem:[#allocation2] sm:$0xff] %vm19_vm0, %v138_v27  ;;  %145 = vst.msk [vmem:[#allocation2 + $0x10] sm:$0xff] %vm19_vm0, %v140_v28 }
  0xf1   :  { %v151_v30 = vld [vmem:[#allocation2 + $0x8] sm:$0xff]  ;;  %v153_v31 = vld [vmem:[#allocation2 + $0x18] sm:$0xff] }
  0xf2   :  { %v150_v32 = vld [vmem:[#allocation2] sm:$0xff]  ;;  %v152_v33 = vld [vmem:[#allocation2 + $0x10] sm:$0xff]  ;;  %v162_v34 = vadd.f32 %v189_v29, %v151_v30  ;;  %v164_v35 = vadd.f32 %v189_v29, %v153_v31 }
  0xf3   :  { %v161_v36 = vadd.f32 %v189_v29, %v150_v32  ;;  %v163_v37 = vadd.f32 %v189_v29, %v152_v33 }
  0xf4   :  { %166 = vst.msk [vmem:[#allocation3 + $0x8] sm:$0xff] %vm19_vm0, %v162_v34  ;;  %168 = vst.msk [vmem:[#allocation3 + $0x18] sm:$0xff] %vm19_vm0, %v164_v35 }
  0xf5   :  { %165 = vst.msk [vmem:[#allocation3] sm:$0xff] %vm19_vm0, %v161_v36  ;;  %167 = vst.msk [vmem:[#allocation3 + $0x10] sm:$0xff] %vm19_vm0, %v163_v37 }
  0xf6   :  { %263 = shalt.err (!%p260_p4)
}
  0xf7   :  { %s264_s13 = scalar_lea.hbm %s370_s3, 512 }
  0xf8   :  { %p265_p5 = scmp.ne.s32.totalorder %s370_s3, %s264_s13  ;;  %p268_p6 = scmp.lt.u32.totalorder %s264_s13, %s370_s3 }
  0xfa   :  { %p270_p7 = pnand %p268_p6, %p265_p5 }
  0xfc   :  { %273 = shalt.err (!%p270_p7)
}
  0xfd   :  { %s278_s18 = smov 128   ;;  %s279_s19 = smov 8  }
  0xfe   :  { %180 = dma.vmem_to_hbm [thread:$0]  %s175_s10, 512, %s370_s3, [#allocation4], %s278_s18, %s278_s18, %s279_s19  }
  0xff   :  { %274 = dma.done.wait [#allocation4], 512  }
 0x100   :  { %275 = vsyncadd [#allocation4], 4294966784 }
 0x101   :  { %184 = vsyncpa [#allocation4], 1 }

</bundles_post_ra>
